<compile_context>
chip_gen: v5e
topology: v5e:2x2
jax: 0.10.0
libtpu: 0.0.40
codegen_flags: <defaults>
</compile_context>

<pallas_src>
import functools
import math

import jax
import jax.numpy as jnp
from jax.experimental import pallas as pl
from jax.experimental.pallas import tpu as pltpu

H1 = 512          # hidden width of layer 1
H2 = 256          # hidden width of layer 2
OUT_ROWS = 8      # sublane rows of the transposed final-layer output tile
_SUBLANE = 8
_TILE_B_MAX = 1024   # diminishing returns past ~1024-row tiles


def _cdiv(a, b):
    return -(-a // b)


def _round_up(x, m):
    return ((x + m - 1) // m) * m


@functools.lru_cache(maxsize=None)
def _vmem_cap_bytes():
    """Per-core VMEM budget: ~78% of physical (~50 MiB on v7x, ~100 MiB on v5e/v6e)."""
    phys = 64 * 1024 * 1024   # conservative default (v7x per-core VMEM)
    try:
        info = pltpu.get_tpu_info()
        phys = int(getattr(info, "vmem_capacity_bytes", phys) or phys)
    except Exception:
        pass
    return int(phys * 0.78)


def _per_row_bytes(D, cbytes):
    # Double-buffered f32 x tile + its in-kernel compute-dtype copy +
    # f32/compute-dtype activations + double-buffered (8, tile_b) f32 out tile.
    return (2 * 4 + cbytes) * D + (4 + cbytes) * (H1 + H2) + 2 * OUT_ROWS * 4


def _resident_bytes(D, cbytes):
    # Weights/biases; conservatively budget 2 pipeline buffers each even though
    # their index_map is constant (Pallas double-buffers inputs by default).
    return 2 * (cbytes * (D * H1 + H1 * H2 + OUT_ROWS * H2) + 4 * (H1 + H2 + 1))


def _pick_tile_b(B, D, cbytes, vmem_cap):
    sub = _SUBLANE if cbytes >= 4 else 16        # bf16 min sublane tile is 16
    per_row = _per_row_bytes(D, cbytes)
    avail = max(vmem_cap - _resident_bytes(D, cbytes) - (6 << 20), per_row * sub)
    tile_max = int(min(avail // per_row, _TILE_B_MAX))
    tile_max = max((tile_max // sub) * sub, sub)

    if B < 2 * 256 and B <= tile_max:
        # Small/medium batch: a single balanced tile with minimal padding.
        return _round_up(B, sub)
    # Large batch: >= 2 balanced grid steps (feeds both v7x TensorCores),
    # MXU-friendly 256-row multiples when VMEM allows.
    n_steps = max(2, _cdiv(B, tile_max))
    quant = 256 if tile_max >= 256 else sub
    tile = min(_round_up(_cdiv(B, n_steps), quant), (tile_max // quant) * quant)
    return max(tile, sub)


def _vmem_limit_bytes(tile_b, D, cbytes, vmem_cap):
    need = _resident_bytes(D, cbytes) + tile_b * _per_row_bytes(D, cbytes)
    return int(min(max(int(1.5 * need) + (2 << 20), 32 << 20), vmem_cap))


def _disc_kernel(x_ref, w1_ref, b1_ref, w2_ref, b2_ref, w3t_ref, b3_ref, o_ref):
    cdt = w1_ref.dtype
    # Layer 1: cast the f32 x tile to the compute dtype in VMEM (cheap VPU work
    # hidden under the MXU); accumulate in f32.
    xc = x_ref[...].astype(cdt)
    h1 = jnp.dot(xc, w1_ref[...], preferred_element_type=jnp.float32) + b1_ref[...]
    h1 = jnp.where(h1 > 0, h1, 0.2 * h1).astype(cdt)

    # Layer 2.
    h2 = jnp.dot(h1, w2_ref[...], preferred_element_type=jnp.float32) + b2_ref[...]
    h2 = jnp.where(h2 > 0, h2, 0.2 * h2).astype(cdt)

    # Layer 3, transposed: (8, 256) contracted with h2 (tile_b, 256) on the 256
    # axis -> (8, tile_b). All 8 sublane rows carry the same result, so the
    # writeback is a tiny lane-dense f32 tile instead of a (tile_b, 128) pad.
    out = jax.lax.dot_general(w3t_ref[...], h2, (((1,), (1,)), ((), ())),
                              preferred_element_type=jnp.float32)
    o_ref[...] = (out + b3_ref[...]).astype(o_ref.dtype)


@functools.partial(jax.jit, static_argnames=("compute_dtype",))
def discriminator_forward(x, params, *, compute_dtype=jnp.bfloat16):
    """x: (B, n_features, window_size) float32. Returns (B, 1) float32."""
    w1, b1, w2, b2, w3, b3 = params
    B = x.shape[0]
    D = math.prod(x.shape[1:])
    x_flat = x.reshape(B, D)                     # same semantics as torch .view(B, -1)

    cbytes = jnp.dtype(compute_dtype).itemsize
    vmem_cap = _vmem_cap_bytes()
    tile_b = _pick_tile_b(B, D, cbytes, vmem_cap)
    B_pad = _round_up(B, tile_b)
    if B_pad != B:
        x_flat = jnp.pad(x_flat, ((0, B_pad - B), (0, 0)))
    n_tiles = B_pad // tile_b

    # Weights: cast once to the compute dtype in the wrapper (tiny, VMEM-resident
    # for the whole grid). x stays f32 and is cast per-tile inside the kernel.
    w1c = w1.astype(compute_dtype)
    w2c = w2.astype(compute_dtype)
    # Final layer computed transposed: broadcast W3^T to 8 sublane rows so each
    # grid step writes a full, unmasked (8, tile_b) tile.
    w3t8 = jnp.broadcast_to(w3.reshape(1, H2), (OUT_ROWS, H2)).astype(compute_dtype)
    b1f = b1.reshape(1, H1).astype(jnp.float32)
    b2f = b2.reshape(1, H2).astype(jnp.float32)
    b3f = b3.reshape(1, 1).astype(jnp.float32)

    # Constant index_map -> DMA'd once, VMEM-resident across all grid steps.
    resident = lambda a: pl.BlockSpec(a.shape, lambda i: (0, 0))

    flops = 2 * B_pad * (D * H1 + H1 * H2 + H2 * OUT_ROWS)
    bytes_accessed = (B_pad * D * 4
                      + cbytes * (D * H1 + H1 * H2 + OUT_ROWS * H2)
                      + 4 * (H1 + H2 + 1)
                      + n_tiles * OUT_ROWS * tile_b * 4)

    out = pl.pallas_call(
        _disc_kernel,
        out_shape=jax.ShapeDtypeStruct((OUT_ROWS * n_tiles, tile_b), jnp.float32),
        grid=(n_tiles,),
        in_specs=[
            pl.BlockSpec((tile_b, D), lambda i: (i, 0)),   # x: streamed per batch tile
            resident(w1c), resident(b1f),
            resident(w2c), resident(b2f),
            resident(w3t8), resident(b3f),
        ],
        out_specs=pl.BlockSpec((OUT_ROWS, tile_b), lambda i: (i, 0)),
        compiler_params=pltpu.CompilerParams(
            dimension_semantics=("parallel",),
            vmem_limit_bytes=_vmem_limit_bytes(tile_b, D, cbytes, vmem_cap),
        ),
        cost_estimate=pl.CostEstimate(flops=flops, transcendentals=0,
                                      bytes_accessed=bytes_accessed),
    )(x_flat, w1c, b1f, w2c, b2f, w3t8, b3f)

    # out[OUT_ROWS*i + r, j] holds the result for batch row i*tile_b + j (any r).
    out = out.reshape(n_tiles, OUT_ROWS, tile_b)[:, 0, :].reshape(B_pad, 1)
    return out[:B]


def init_params(key, n_features, window_size):
    """Deterministic init mimicking PyTorch nn.Linear default (+-1/sqrt(fan_in)).

    Weights are stored as (in, out) (already transposed vs. torch)."""
    D = n_features * window_size
    dims = [(D, H1), (H1, H2), (H2, 1)]
    params = []
    for fan_in, fan_out in dims:
        key, kw, kb = jax.random.split(key, 3)
        bound = 1.0 / jnp.sqrt(jnp.float32(fan_in))
        w = jax.random.uniform(kw, (fan_in, fan_out), jnp.float32, -bound, bound)
        b = jax.random.uniform(kb, (1, fan_out), jnp.float32, -bound, bound)
        params.extend([w, b])
    return tuple(params)


def _reference_forward(x, params):
    """Pure-JAX f32 reference for correctness check."""
    w1, b1, w2, b2, w3, b3 = params
    h = x.reshape(x.shape[0], -1)
    h = h @ w1 + b1
    h = jnp.where(h > 0, h, 0.2 * h)
    h = h @ w2 + b2
    h = jnp.where(h > 0, h, 0.2 * h)
    return h @ w3 + b3


if __name__ == "__main__":
    key = jax.random.PRNGKey(0)
    n_features, window_size, batch = 4, 8, 2

    kx, kp = jax.random.split(key)
    x = jax.random.normal(kx, (batch, n_features, window_size), jnp.float32)
    params = init_params(kp, n_features, window_size)

    ref = _reference_forward(x, params)

    # f32 compute path: tight match against the reference.
    out_f32 = jax.block_until_ready(
        discriminator_forward(x, params, compute_dtype=jnp.float32))
    assert out_f32.shape == (batch, 1), out_f32.shape
    assert jnp.allclose(out_f32, ref, atol=1e-4, rtol=1e-4), (out_f32, ref)

    # bf16 path (default, fast): looser tolerance for bf16 inputs / f32 accum.
    out_bf16 = jax.block_until_ready(discriminator_forward(x, params))
    assert out_bf16.shape == (batch, 1), out_bf16.shape
    assert jnp.allclose(out_bf16, ref, atol=3e-2, rtol=3e-2), (out_bf16, ref)

    print("KERNEL_OK")
</pallas_src>

<mosaic_0001>
module attributes {stable_mosaic.version = 11 : i64} {
  func.func @_disc_kernel(%arg0: i32, %arg1: memref<8x32xf32, #tpu.memory_space<vmem>>, %arg2: memref<32x512xf32, #tpu.memory_space<vmem>>, %arg3: memref<1x512xf32, #tpu.memory_space<vmem>>, %arg4: memref<512x256xf32, #tpu.memory_space<vmem>>, %arg5: memref<1x256xf32, #tpu.memory_space<vmem>>, %arg6: memref<8x256xf32, #tpu.memory_space<vmem>>, %arg7: memref<1x1xf32, #tpu.memory_space<vmem>>, %arg8: memref<8x8xf32, #tpu.memory_space<vmem>>) attributes {dimension_semantics = [#tpu.dimension_semantics<parallel>], iteration_bounds = array<i64: 1>, scalar_prefetch = 0 : i64, scratch_operands = 0 : i64, tpu.core_type = #tpu.core_type<tc>, window_params = [{transform_indices = @transform_0, window_bounds = array<i64: 8, 32>}, {pipeline_mode = #tpu.pipeline_mode<synchronous>, transform_indices = @transform_1, window_bounds = array<i64: 32, 512>}, {pipeline_mode = #tpu.pipeline_mode<synchronous>, transform_indices = @transform_2, window_bounds = array<i64: 1, 512>}, {pipeline_mode = #tpu.pipeline_mode<synchronous>, transform_indices = @transform_3, window_bounds = array<i64: 512, 256>}, {pipeline_mode = #tpu.pipeline_mode<synchronous>, transform_indices = @transform_4, window_bounds = array<i64: 1, 256>}, {pipeline_mode = #tpu.pipeline_mode<synchronous>, transform_indices = @transform_5, window_bounds = array<i64: 8, 256>}, {pipeline_mode = #tpu.pipeline_mode<synchronous>, transform_indices = @transform_6, window_bounds = array<i64: 1, 1>}, {transform_indices = @transform_7, window_bounds = array<i64: 8, 8>}]} {
    %c0 = arith.constant 0 : index
    %c0_0 = arith.constant 0 : index
    %0 = vector.load %arg1[%c0, %c0_0] : memref<8x32xf32, #tpu.memory_space<vmem>>, vector<8x32xf32>
    %c0_1 = arith.constant 0 : index
    %c0_2 = arith.constant 0 : index
    %1 = vector.load %arg2[%c0_1, %c0_2] : memref<32x512xf32, #tpu.memory_space<vmem>>, vector<32x512xf32>
    %cst = arith.constant dense<0.000000e+00> : vector<8x512xf32>
    %2 = tpu.matmul %0, %1, %cst {dimension_numbers = #tpu.dot_dimension_numbers<[1], [0], [0], [1], [0, 0, 1, 1], [], []>} : vector<8x32xf32>, vector<32x512xf32>, vector<8x512xf32> -> vector<8x512xf32>
    %c0_3 = arith.constant 0 : index
    %c0_4 = arith.constant 0 : index
    %3 = vector.load %arg3[%c0_3, %c0_4] : memref<1x512xf32, #tpu.memory_space<vmem>>, vector<1x512xf32>
    %4 = vector.broadcast %3 : vector<1x512xf32> to vector<8x512xf32>
    %5 = arith.addf %2, %4 : vector<8x512xf32>
    %cst_5 = arith.constant 0.000000e+00 : f32
    %6 = vector.broadcast %cst_5 : f32 to vector<8x512xf32>
    %7 = arith.cmpf ogt, %5, %6 : vector<8x512xf32>
    %cst_6 = arith.constant 2.000000e-01 : f32
    %8 = vector.broadcast %cst_6 : f32 to vector<8x512xf32>
    %9 = arith.mulf %8, %5 : vector<8x512xf32>
    %10 = arith.select %7, %5, %9 : vector<8x512xi1>, vector<8x512xf32>
    %c0_7 = arith.constant 0 : index
    %c0_8 = arith.constant 0 : index
    %11 = vector.load %arg4[%c0_7, %c0_8] : memref<512x256xf32, #tpu.memory_space<vmem>>, vector<512x256xf32>
    %cst_9 = arith.constant dense<0.000000e+00> : vector<8x256xf32>
    %12 = tpu.matmul %10, %11, %cst_9 {dimension_numbers = #tpu.dot_dimension_numbers<[1], [0], [0], [1], [0, 0, 1, 1], [], []>} : vector<8x512xf32>, vector<512x256xf32>, vector<8x256xf32> -> vector<8x256xf32>
    %c0_10 = arith.constant 0 : index
    %c0_11 = arith.constant 0 : index
    %13 = vector.load %arg5[%c0_10, %c0_11] : memref<1x256xf32, #tpu.memory_space<vmem>>, vector<1x256xf32>
    %14 = vector.broadcast %13 : vector<1x256xf32> to vector<8x256xf32>
    %15 = arith.addf %12, %14 : vector<8x256xf32>
    %cst_12 = arith.constant 0.000000e+00 : f32
    %16 = vector.broadcast %cst_12 : f32 to vector<8x256xf32>
    %17 = arith.cmpf ogt, %15, %16 : vector<8x256xf32>
    %cst_13 = arith.constant 2.000000e-01 : f32
    %18 = vector.broadcast %cst_13 : f32 to vector<8x256xf32>
    %19 = arith.mulf %18, %15 : vector<8x256xf32>
    %20 = arith.select %17, %15, %19 : vector<8x256xi1>, vector<8x256xf32>
    %c0_14 = arith.constant 0 : index
    %c0_15 = arith.constant 0 : index
    %21 = vector.load %arg6[%c0_14, %c0_15] : memref<8x256xf32, #tpu.memory_space<vmem>>, vector<8x256xf32>
    %cst_16 = arith.constant dense<0.000000e+00> : vector<8x8xf32>
    %22 = tpu.matmul %21, %20, %cst_16 {dimension_numbers = #tpu.dot_dimension_numbers<[1], [1], [0], [0], [0, 0, 1, 0], [], []>} : vector<8x256xf32>, vector<8x256xf32>, vector<8x8xf32> -> vector<8x8xf32>
    %c0_17 = arith.constant 0 : index
    %c0_18 = arith.constant 0 : index
    %23 = vector.load %arg7[%c0_17, %c0_18] : memref<1x1xf32, #tpu.memory_space<vmem>>, vector<1x1xf32>
    %24 = vector.broadcast %23 : vector<1x1xf32> to vector<8x8xf32>
    %25 = arith.addf %22, %24 : vector<8x8xf32>
    %c0_19 = arith.constant 0 : index
    %c0_20 = arith.constant 0 : index
    %26 = vector.load %arg8[%c0_19, %c0_20] : memref<8x8xf32, #tpu.memory_space<vmem>>, vector<8x8xf32>
    tpu.vector_store %arg8[%c0_19, %c0_20], %25 {strides = array<i32>} : memref<8x8xf32, #tpu.memory_space<vmem>>, vector<8x8xf32>,
    return
  }
  func.func @transform_0(%arg0: i32) -> (i32, i32) {
    %c0_i32 = arith.constant 0 : i32
    %c0_i32_0 = arith.constant 0 : i32
    return %arg0, %c0_i32 : i32, i32
  }
  func.func @transform_1(%arg0: i32) -> (i32, i32) {
    %c0_i32 = arith.constant 0 : i32
    %c0_i32_0 = arith.constant 0 : i32
    %c0_i32_1 = arith.constant 0 : i32
    return %c0_i32, %c0_i32_0 : i32, i32
  }
  func.func @transform_2(%arg0: i32) -> (i32, i32) {
    %c0_i32 = arith.constant 0 : i32
    %c0_i32_0 = arith.constant 0 : i32
    %c0_i32_1 = arith.constant 0 : i32
    return %c0_i32, %c0_i32_0 : i32, i32
  }
  func.func @transform_3(%arg0: i32) -> (i32, i32) {
    %c0_i32 = arith.constant 0 : i32
    %c0_i32_0 = arith.constant 0 : i32
    %c0_i32_1 = arith.constant 0 : i32
    return %c0_i32, %c0_i32_0 : i32, i32
  }
  func.func @transform_4(%arg0: i32) -> (i32, i32) {
    %c0_i32 = arith.constant 0 : i32
    %c0_i32_0 = arith.constant 0 : i32
    %c0_i32_1 = arith.constant 0 : i32
    return %c0_i32, %c0_i32_0 : i32, i32
  }
  func.func @transform_5(%arg0: i32) -> (i32, i32) {
    %c0_i32 = arith.constant 0 : i32
    %c0_i32_0 = arith.constant 0 : i32
    %c0_i32_1 = arith.constant 0 : i32
    return %c0_i32, %c0_i32_0 : i32, i32
  }
  func.func @transform_6(%arg0: i32) -> (i32, i32) {
    %c0_i32 = arith.constant 0 : i32
    %c0_i32_0 = arith.constant 0 : i32
    %c0_i32_1 = arith.constant 0 : i32
    return %c0_i32, %c0_i32_0 : i32, i32
  }
  func.func @transform_7(%arg0: i32) -> (i32, i32) {
    %c0_i32 = arith.constant 0 : i32
    %c0_i32_0 = arith.constant 0 : i32
    return %arg0, %c0_i32 : i32, i32
  }
}

</mosaic_0001>

<bundles_post_ra>
// kernel: discriminator_forward.1
= control target key start
LH: loop header
LB: loop body
LE: loop exit
PB: predicated region body
PF: predicated region fallthrough
CT: control target
= control target key end

     0   :  { %s679_s0 = inlined_call_operand.vmem [shape: f32[8,32], index: 0, kind: input, shape index: {}]   ;;  %s680_s1 = inlined_call_operand.hbm [shape: f32[32,512], index: 1, kind: input, shape index: {}]   ;;  %s681_s2 = inlined_call_operand.vmem [shape: f32[1,512], index: 2, kind: input, shape index: {}]   ;;  %s682_s3 = inlined_call_operand.hbm [shape: f32[512,256], index: 3, kind: input, shape index: {}]   ;;  %s683_s4 = inlined_call_operand.vmem [shape: f32[1,256], index: 4, kind: input, shape index: {}]   ;;  %s684_s5 = inlined_call_operand.vmem [shape: f32[8,256], index: 5, kind: input, shape index: {}]   ;;  %s685_s6 = inlined_call_operand.<no memory space> [shape: f32[1,1], index: 6, kind: input, shape index: {}]   ;;  %s686_s7 = inlined_call_operand.vmem [shape: f32[8,8], index: 7, kind: output, shape index: {}]  }
   0x1   :  { %v12_v0 = vstv %s685_s6 }
   0x2   :  { %13 = vst [vmem:[#allocation2] sm:$0x1] %v12_v0 }
   0x3   :  { %14 = vsyncpa [#allocation4], 0  ;;  %s22_s28 = sshll.u32 %s680_s1, 4  ;;  %s23_s28 = int_to_ptr.hbm [resolvable:$true] %s22_s28 }
   0x4   :  { %15 = vsyncpa [#allocation6], 0  ;;  %s605_s29 = smov [#allocation3]   ;;  %s37_s10 = sshll.u32 %s682_s3, 4  ;;  %s38_s10 = int_to_ptr.hbm [resolvable:$true] %s37_s10 }
   0x5   :  { %s24_s30 = sshll.u32 %s605_s29, 4  ;;  %s606_s11 = smov 512   ;;  %s25_s30 = int_to_ptr.vmem [resolvable:$true] %s24_s30 }
   0x6   :  { %s607_s12 = smov 32   ;;  %s608_s6 = smov [#allocation5]  }
   0x7   :  { %30 = dma.hbm_to_vmem [thread:$0]  %s23_s28, 2048, %s25_s30, [#allocation4], %s606_s11, %s606_s11, %s607_s12  }
   0x8   :  { %s39_s13 = sshll.u32 %s608_s6, 4  ;;  %s609_s14 = smov 256   ;;  %s40_s13 = int_to_ptr.vmem [resolvable:$true] %s39_s13 }
   0x9   :  { %s610_s15 = smov 16  }
   0xa   :  { %45 = dma.hbm_to_vmem [thread:$0]  %s38_s10, 16384, %s40_s13, [#allocation6], %s609_s14, %s609_s14, %s610_s15  }
   0xb   :  { %601 = dma.done.wait [#allocation4], 2048  }
   0xc   :  { %602 = vsyncadd [#allocation4], 4294965248 }
   0xd   :  { %603 = dma.done.wait [#allocation6], 16384  }
   0xe   :  { %604 = vsyncadd [#allocation6], 4294950912  ;;  %v73_v1 = vld [vmem:[#allocation3 + $0x60] sm:$0xff]  ;;  %v74_v2 = vld [vmem:[#allocation3 + $0x68] sm:$0xff]  ;;  %vm87_vm0 = vcmask 261120   ;;  %vm532_vm7 = vcmask 64512  }
   0xf   :  { %v75_v3 = vld [vmem:[#allocation3 + $0x70] sm:$0xff]  ;;  %103 = vmatpush.msra.mxu0 %v73_v1  ;;  %123 = vmatpush.msra.mxu1 %v74_v2  ;;  %v76_v4 = vld [vmem:[#allocation3 + $0x78] sm:$0xff]  ;;  %v69_v5 = vld [vmem:[#allocation3 + $0x40] sm:$0xff] }
  0x10   :  { %v70_v6 = vld [vmem:[#allocation3 + $0x48] sm:$0xff]  ;;  %143 = vmatpush.msra.mxu2 %v75_v3  ;;  %163 = vmatpush.msra.mxu3 %v76_v4  ;;  %v71_v7 = vld [vmem:[#allocation3 + $0x50] sm:$0xff]  ;;  %v72_v8 = vld [vmem:[#allocation3 + $0x58] sm:$0xff] }
  0x11   :  { %v65_v9 = vld [vmem:[#allocation3 + $0x20] sm:$0xff]  ;;  %104 = vmatpush.msra.mxu0 %v69_v5  ;;  %124 = vmatpush.msra.mxu1 %v70_v6  ;;  %v66_v10 = vld [vmem:[#allocation3 + $0x28] sm:$0xff]  ;;  %v67_v11 = vld [vmem:[#allocation3 + $0x30] sm:$0xff] }
  0x12   :  { %v68_v12 = vld [vmem:[#allocation3 + $0x38] sm:$0xff]  ;;  %144 = vmatpush.msra.mxu2 %v71_v7  ;;  %164 = vmatpush.msra.mxu3 %v72_v8  ;;  %v61_v13 = vld [vmem:[#allocation3] sm:$0xff]  ;;  %v62_v14 = vld [vmem:[#allocation3 + $0x8] sm:$0xff] }
  0x13   :  { %105 = vmatpush.msra.mxu0 %v65_v9  ;;  %125 = vmatpush.msra.mxu1 %v66_v10  ;;  %v63_v15 = vld [vmem:[#allocation3 + $0x10] sm:$0xff]  ;;  %v64_v16 = vld [vmem:[#allocation3 + $0x18] sm:$0xff]  ;;  %v211_v22 = vld [vmem:[#allocation5 + $0xe0] sm:$0xff] }
  0x14   :  { %145 = vmatpush.msra.mxu2 %v67_v11  ;;  %165 = vmatpush.msra.mxu3 %v68_v12  ;;  %v60_v17 = vld [vmem:[%s679_s0] sm:$0xff]  ;;  %v213_v18 = vld [vmem:[#allocation5 + $0xf0] sm:$0xff] }
  0x15   :  { %106 = vmatpush.msra.mxu0 %v61_v13  ;;  %126 = vmatpush.msra.mxu1 %v62_v14  ;;  %v245_v19 = vld [vmem:[#allocation5 + $0x1f0] sm:$0xff]  ;;  %v243_v23 = vld [vmem:[#allocation5 + $0x1e0] sm:$0xff] }
  0x16   :  { %146 = vmatpush.msra.mxu2 %v63_v15  ;;  %166 = vmatpush.msra.mxu3 %v64_v16  ;;  %v277_v20 = vld [vmem:[#allocation5 + $0x2f0] sm:$0xff]  ;;  %v275_v24 = vld [vmem:[#allocation5 + $0x2e0] sm:$0xff]  ;;  %v214_v16 = vld [vmem:[#allocation5 + $0xf8] sm:$0xff] }
  0x17   :  { %540 = vmatmul.msk.f32.vlgmr.msra.gmra.mxu0 %vm87_vm0, %v60_v17  ;;  %541 = vmatmul.msk.f32.vlgmr.msra.gmra.mxu1 %vm87_vm0, %v60_v17  ;;  %v309_v21 = vld [vmem:[#allocation5 + $0x3f0] sm:$0xff]  ;;  %v307_v25 = vld [vmem:[#allocation5 + $0x3e0] sm:$0xff] }
  0x18   :  { %542 = vmatmul.msk.f32.vlgmr.msra.gmra.mxu2 %vm87_vm0, %v60_v17  ;;  %543 = vmatmul.msk.f32.vlgmr.msra.gmra.mxu3 %vm87_vm0, %v60_v17  ;;  %v209_v26 = vld [vmem:[#allocation5 + $0xd0] sm:$0xff]  ;;  %v207_v30 = vld [vmem:[#allocation5 + $0xc0] sm:$0xff]  ;;  %v246_v17 = vld [vmem:[#allocation5 + $0x1f8] sm:$0xff] }
  0x19   :  { %317 = vmatpush.msrb.mxu0 %v213_v18  ;;  %337 = vmatpush.msrb.mxu1 %v245_v19  ;;  %v241_v27 = vld [vmem:[#allocation5 + $0x1d0] sm:$0xff]  ;;  %v239_v31 = vld [vmem:[#allocation5 + $0x1c0] sm:$0xff] }
  0x1a   :  { %357 = vmatpush.msrb.mxu2 %v277_v20  ;;  %377 = vmatpush.msrb.mxu3 %v309_v21  ;;  %v273_v28 = vld [vmem:[#allocation5 + $0x2d0] sm:$0xff]  ;;  %v271_v32 = vld [vmem:[#allocation5 + $0x2c0] sm:$0xff]  ;;  %v212_v20 = vld [vmem:[#allocation5 + $0xe8] sm:$0xff] }
  0x1b   :  { %318 = vmatpush.msrb.mxu0 %v211_v22  ;;  %338 = vmatpush.msrb.mxu1 %v243_v23  ;;  %v305_v29 = vld [vmem:[#allocation5 + $0x3d0] sm:$0xff]  ;;  %v303_v33 = vld [vmem:[#allocation5 + $0x3c0] sm:$0xff]  ;;  %v244_v21 = vld [vmem:[#allocation5 + $0x1e8] sm:$0xff] }
  0x1c   :  { %358 = vmatpush.msrb.mxu2 %v275_v24  ;;  %378 = vmatpush.msrb.mxu3 %v307_v25  ;;  %v205_v34 = vld [vmem:[#allocation5 + $0xb0] sm:$0xff]  ;;  %v203_v38 = vld [vmem:[#allocation5 + $0xa0] sm:$0xff]  ;;  %v278_v22 = vld [vmem:[#allocation5 + $0x2f8] sm:$0xff] }
  0x1d   :  { %319 = vmatpush.msrb.mxu0 %v209_v26  ;;  %339 = vmatpush.msrb.mxu1 %v241_v27  ;;  %v237_v35 = vld [vmem:[#allocation5 + $0x1b0] sm:$0xff]  ;;  %v235_v39 = vld [vmem:[#allocation5 + $0x1a0] sm:$0xff]  ;;  %v310_v23 = vld [vmem:[#allocation5 + $0x3f8] sm:$0xff] }
  0x1e   :  { %359 = vmatpush.msrb.mxu2 %v273_v28  ;;  %379 = vmatpush.msrb.mxu3 %v305_v29  ;;  %v269_v36 = vld [vmem:[#allocation5 + $0x2b0] sm:$0xff]  ;;  %v267_v40 = vld [vmem:[#allocation5 + $0x2a0] sm:$0xff]  ;;  %v210_v24 = vld [vmem:[#allocation5 + $0xd8] sm:$0xff] }
  0x1f   :  { %320 = vmatpush.msrb.mxu0 %v207_v30  ;;  %340 = vmatpush.msrb.mxu1 %v239_v31  ;;  %v301_v37 = vld [vmem:[#allocation5 + $0x3b0] sm:$0xff]  ;;  %v299_v41 = vld [vmem:[#allocation5 + $0x3a0] sm:$0xff]  ;;  %v242_v25 = vld [vmem:[#allocation5 + $0x1d8] sm:$0xff] }
  0x20   :  { %360 = vmatpush.msrb.mxu2 %v271_v32  ;;  %380 = vmatpush.msrb.mxu3 %v303_v33  ;;  %v201_v42 = vld [vmem:[#allocation5 + $0x90] sm:$0xff]  ;;  %v199_v46 = vld [vmem:[#allocation5 + $0x80] sm:$0xff]  ;;  %v276_v26 = vld [vmem:[#allocation5 + $0x2e8] sm:$0xff] }
  0x21   :  { %321 = vmatpush.msrb.mxu0 %v205_v34  ;;  %341 = vmatpush.msrb.mxu1 %v237_v35  ;;  %v233_v43 = vld [vmem:[#allocation5 + $0x190] sm:$0xff]  ;;  %v231_v47 = vld [vmem:[#allocation5 + $0x180] sm:$0xff]  ;;  %v308_v27 = vld [vmem:[#allocation5 + $0x3e8] sm:$0xff] }
  0x22   :  { %361 = vmatpush.msrb.mxu2 %v269_v36  ;;  %381 = vmatpush.msrb.mxu3 %v301_v37  ;;  %v265_v44 = vld [vmem:[#allocation5 + $0x290] sm:$0xff]  ;;  %v263_v48 = vld [vmem:[#allocation5 + $0x280] sm:$0xff]  ;;  %v208_v28 = vld [vmem:[#allocation5 + $0xc8] sm:$0xff] }
  0x23   :  { %322 = vmatpush.msrb.mxu0 %v203_v38  ;;  %342 = vmatpush.msrb.mxu1 %v235_v39  ;;  %v297_v45 = vld [vmem:[#allocation5 + $0x390] sm:$0xff]  ;;  %v295_v49 = vld [vmem:[#allocation5 + $0x380] sm:$0xff]  ;;  %v240_v29 = vld [vmem:[#allocation5 + $0x1c8] sm:$0xff] }
  0x24   :  { %362 = vmatpush.msrb.mxu2 %v267_v40  ;;  %382 = vmatpush.msrb.mxu3 %v299_v41  ;;  %v197_v50 = vld [vmem:[#allocation5 + $0x70] sm:$0xff]  ;;  %v195_v54 = vld [vmem:[#allocation5 + $0x60] sm:$0xff]  ;;  %v274_v30 = vld [vmem:[#allocation5 + $0x2d8] sm:$0xff] }
  0x25   :  { %323 = vmatpush.msrb.mxu0 %v201_v42  ;;  %343 = vmatpush.msrb.mxu1 %v233_v43  ;;  %v229_v51 = vld [vmem:[#allocation5 + $0x170] sm:$0xff]  ;;  %v227_v55 = vld [vmem:[#allocation5 + $0x160] sm:$0xff]  ;;  %v306_v31 = vld [vmem:[#allocation5 + $0x3d8] sm:$0xff] }
  0x26   :  { %363 = vmatpush.msrb.mxu2 %v265_v44  ;;  %383 = vmatpush.msrb.mxu3 %v297_v45  ;;  %v261_v52 = vld [vmem:[#allocation5 + $0x270] sm:$0xff]  ;;  %v259_v56 = vld [vmem:[#allocation5 + $0x260] sm:$0xff]  ;;  %v206_v32 = vld [vmem:[#allocation5 + $0xb8] sm:$0xff] }
  0x27   :  { %324 = vmatpush.msrb.mxu0 %v199_v46  ;;  %344 = vmatpush.msrb.mxu1 %v231_v47  ;;  %v293_v53 = vld [vmem:[#allocation5 + $0x370] sm:$0xff]  ;;  %v291_v57 = vld [vmem:[#allocation5 + $0x360] sm:$0xff]  ;;  %v238_v33 = vld [vmem:[#allocation5 + $0x1b8] sm:$0xff] }
  0x28   :  { %364 = vmatpush.msrb.mxu2 %v263_v48  ;;  %384 = vmatpush.msrb.mxu3 %v295_v49  ;;  %v193_v58 = vld [vmem:[#allocation5 + $0x50] sm:$0xff]  ;;  %v191_v62 = vld [vmem:[#allocation5 + $0x40] sm:$0xff]  ;;  %v272_v34 = vld [vmem:[#allocation5 + $0x2c8] sm:$0xff] }
  0x29   :  { %325 = vmatpush.msrb.mxu0 %v197_v50  ;;  %345 = vmatpush.msrb.mxu1 %v229_v51  ;;  %v225_v59 = vld [vmem:[#allocation5 + $0x150] sm:$0xff]  ;;  %v223_v63 = vld [vmem:[#allocation5 + $0x140] sm:$0xff]  ;;  %v304_v35 = vld [vmem:[#allocation5 + $0x3c8] sm:$0xff] }
  0x2a   :  { %365 = vmatpush.msrb.mxu2 %v261_v52  ;;  %385 = vmatpush.msrb.mxu3 %v293_v53  ;;  %v257_v60 = vld [vmem:[#allocation5 + $0x250] sm:$0xff]  ;;  %v255_v0 = vld [vmem:[#allocation5 + $0x240] sm:$0xff]  ;;  %v204_v36 = vld [vmem:[#allocation5 + $0xa8] sm:$0xff] }
  0x2b   :  { %326 = vmatpush.msrb.mxu0 %v195_v54  ;;  %346 = vmatpush.msrb.mxu1 %v227_v55  ;;  %v289_v61 = vld [vmem:[#allocation5 + $0x350] sm:$0xff]  ;;  %v287_v1 = vld [vmem:[#allocation5 + $0x340] sm:$0xff]  ;;  %v236_v37 = vld [vmem:[#allocation5 + $0x1a8] sm:$0xff] }
  0x2c   :  { %366 = vmatpush.msrb.mxu2 %v259_v56  ;;  %386 = vmatpush.msrb.mxu3 %v291_v57  ;;  %v189_v2 = vld [vmem:[#allocation5 + $0x30] sm:$0xff]  ;;  %v187_v6 = vld [vmem:[#allocation5 + $0x20] sm:$0xff]  ;;  %v270_v38 = vld [vmem:[#allocation5 + $0x2b8] sm:$0xff] }
  0x2d   :  { %327 = vmatpush.msrb.mxu0 %v193_v58  ;;  %347 = vmatpush.msrb.mxu1 %v225_v59  ;;  %v221_v3 = vld [vmem:[#allocation5 + $0x130] sm:$0xff]  ;;  %v219_v7 = vld [vmem:[#allocation5 + $0x120] sm:$0xff]  ;;  %v302_v39 = vld [vmem:[#allocation5 + $0x3b8] sm:$0xff] }
  0x2e   :  { %367 = vmatpush.msrb.mxu2 %v257_v60  ;;  %387 = vmatpush.msrb.mxu3 %v289_v61  ;;  %v253_v4 = vld [vmem:[#allocation5 + $0x230] sm:$0xff]  ;;  %v251_v8 = vld [vmem:[#allocation5 + $0x220] sm:$0xff]  ;;  %v202_v40 = vld [vmem:[#allocation5 + $0x98] sm:$0xff] }
  0x2f   :  { %328 = vmatpush.msrb.mxu0 %v191_v62  ;;  %348 = vmatpush.msrb.mxu1 %v223_v63  ;;  %v285_v5 = vld [vmem:[#allocation5 + $0x330] sm:$0xff]  ;;  %v283_v9 = vld [vmem:[#allocation5 + $0x320] sm:$0xff]  ;;  %v234_v41 = vld [vmem:[#allocation5 + $0x198] sm:$0xff] }
  0x30   :  { %368 = vmatpush.msrb.mxu2 %v255_v0  ;;  %388 = vmatpush.msrb.mxu3 %v287_v1  ;;  %v185_v10 = vld [vmem:[#allocation5 + $0x10] sm:$0xff]  ;;  %v183_v14 = vld [vmem:[#allocation5] sm:$0xff]  ;;  %v268_v42 = vld [vmem:[#allocation5 + $0x2a8] sm:$0xff] }
  0x31   :  { %329 = vmatpush.msrb.mxu0 %v189_v2  ;;  %349 = vmatpush.msrb.mxu1 %v221_v3  ;;  %v217_v11 = vld [vmem:[#allocation5 + $0x110] sm:$0xff]  ;;  %v215_v15 = vld [vmem:[#allocation5 + $0x100] sm:$0xff]  ;;  %v300_v43 = vld [vmem:[#allocation5 + $0x3a8] sm:$0xff] }
  0x32   :  { %369 = vmatpush.msrb.mxu2 %v253_v4  ;;  %389 = vmatpush.msrb.mxu3 %v285_v5  ;;  %v249_v12 = vld [vmem:[#allocation5 + $0x210] sm:$0xff]  ;;  %v247_v18 = vld [vmem:[#allocation5 + $0x200] sm:$0xff]  ;;  %v200_v44 = vld [vmem:[#allocation5 + $0x88] sm:$0xff] }
  0x33   :  { %330 = vmatpush.msrb.mxu0 %v187_v6  ;;  %350 = vmatpush.msrb.mxu1 %v219_v7  ;;  %v281_v13 = vld [vmem:[#allocation5 + $0x310] sm:$0xff]  ;;  %v279_v19 = vld [vmem:[#allocation5 + $0x300] sm:$0xff]  ;;  %v232_v45 = vld [vmem:[#allocation5 + $0x188] sm:$0xff] }
  0x34   :  { %370 = vmatpush.msrb.mxu2 %v251_v8  ;;  %390 = vmatpush.msrb.mxu3 %v283_v9  ;;  %v198_v46 = vld [vmem:[#allocation5 + $0x78] sm:$0xff]  ;;  %v196_v48 = vld [vmem:[#allocation5 + $0x68] sm:$0xff] }
  0x35   :  { %331 = vmatpush.msrb.mxu0 %v185_v10  ;;  %351 = vmatpush.msrb.mxu1 %v217_v11  ;;  %v230_v47 = vld [vmem:[#allocation5 + $0x178] sm:$0xff]  ;;  %v228_v49 = vld [vmem:[#allocation5 + $0x168] sm:$0xff] }
  0x36   :  { %371 = vmatpush.msrb.mxu2 %v249_v12  ;;  %391 = vmatpush.msrb.mxu3 %v281_v13  ;;  %v266_v50 = vld [vmem:[#allocation5 + $0x298] sm:$0xff]  ;;  %v264_v54 = vld [vmem:[#allocation5 + $0x288] sm:$0xff] }
  0x37   :  { %332 = vmatpush.msrb.mxu0 %v183_v14  ;;  %352 = vmatpush.msrb.mxu1 %v215_v15  ;;  %v298_v51 = vld [vmem:[#allocation5 + $0x398] sm:$0xff]  ;;  %v296_v55 = vld [vmem:[#allocation5 + $0x388] sm:$0xff] }
  0x38   :  { %372 = vmatpush.msrb.mxu2 %v247_v18  ;;  %392 = vmatpush.msrb.mxu3 %v279_v19  ;;  %v194_v52 = vld [vmem:[#allocation5 + $0x58] sm:$0xff]  ;;  %v192_v56 = vld [vmem:[#allocation5 + $0x48] sm:$0xff] }
  0x39   :  { %397 = vmatpush.msra.mxu0 %v214_v16  ;;  %417 = vmatpush.msra.mxu1 %v246_v17  ;;  %v226_v53 = vld [vmem:[#allocation5 + $0x158] sm:$0xff]  ;;  %v224_v57 = vld [vmem:[#allocation5 + $0x148] sm:$0xff] }
  0x3a   :  { %437 = vmatpush.msra.mxu2 %v278_v22  ;;  %457 = vmatpush.msra.mxu3 %v310_v23  ;;  %v262_v58 = vld [vmem:[#allocation5 + $0x278] sm:$0xff]  ;;  %v260_v62 = vld [vmem:[#allocation5 + $0x268] sm:$0xff] }
  0x3b   :  { %398 = vmatpush.msra.mxu0 %v212_v20  ;;  %418 = vmatpush.msra.mxu1 %v244_v21  ;;  %v294_v59 = vld [vmem:[#allocation5 + $0x378] sm:$0xff]  ;;  %v292_v63 = vld [vmem:[#allocation5 + $0x368] sm:$0xff] }
  0x3c   :  { %438 = vmatpush.msra.mxu2 %v276_v26  ;;  %458 = vmatpush.msra.mxu3 %v308_v27  ;;  %v190_v60 = vld [vmem:[#allocation5 + $0x38] sm:$0xff]  ;;  %v188_v0 = vld [vmem:[#allocation5 + $0x28] sm:$0xff] }
  0x3d   :  { %399 = vmatpush.msra.mxu0 %v210_v24  ;;  %419 = vmatpush.msra.mxu1 %v242_v25  ;;  %v222_v61 = vld [vmem:[#allocation5 + $0x138] sm:$0xff]  ;;  %v220_v1 = vld [vmem:[#allocation5 + $0x128] sm:$0xff] }
  0x3e   :  { %439 = vmatpush.msra.mxu2 %v274_v30  ;;  %459 = vmatpush.msra.mxu3 %v306_v31  ;;  %v258_v2 = vld [vmem:[#allocation5 + $0x258] sm:$0xff]  ;;  %v256_v6 = vld [vmem:[#allocation5 + $0x248] sm:$0xff] }
  0x3f   :  { %400 = vmatpush.msra.mxu0 %v208_v28  ;;  %420 = vmatpush.msra.mxu1 %v240_v29  ;;  %v290_v3 = vld [vmem:[#allocation5 + $0x358] sm:$0xff]  ;;  %v288_v7 = vld [vmem:[#allocation5 + $0x348] sm:$0xff] }
  0x40   :  { %440 = vmatpush.msra.mxu2 %v272_v34  ;;  %460 = vmatpush.msra.mxu3 %v304_v35  ;;  %v186_v4 = vld [vmem:[#allocation5 + $0x18] sm:$0xff]  ;;  %v184_v8 = vld [vmem:[#allocation5 + $0x8] sm:$0xff] }
  0x41   :  { %401 = vmatpush.msra.mxu0 %v206_v32  ;;  %421 = vmatpush.msra.mxu1 %v238_v33  ;;  %v218_v5 = vld [vmem:[#allocation5 + $0x118] sm:$0xff]  ;;  %v216_v9 = vld [vmem:[#allocation5 + $0x108] sm:$0xff] }
  0x42   :  { %441 = vmatpush.msra.mxu2 %v270_v38  ;;  %461 = vmatpush.msra.mxu3 %v302_v39  ;;  %v254_v10 = vld [vmem:[#allocation5 + $0x238] sm:$0xff]  ;;  %v252_v12 = vld [vmem:[#allocation5 + $0x228] sm:$0xff] }
  0x43   :  { %402 = vmatpush.msra.mxu0 %v204_v36  ;;  %422 = vmatpush.msra.mxu1 %v236_v37  ;;  %v286_v11 = vld [vmem:[#allocation5 + $0x338] sm:$0xff]  ;;  %v284_v13 = vld [vmem:[#allocation5 + $0x328] sm:$0xff] }
  0x44   :  { %442 = vmatpush.msra.mxu2 %v268_v42  ;;  %462 = vmatpush.msra.mxu3 %v300_v43  ;;  %v250_v14 = vld [vmem:[#allocation5 + $0x218] sm:$0xff]  ;;  %v248_v16 = vld [vmem:[#allocation5 + $0x208] sm:$0xff] }
  0x45   :  { %403 = vmatpush.msra.mxu0 %v202_v40  ;;  %423 = vmatpush.msra.mxu1 %v234_v41  ;;  %v282_v15 = vld [vmem:[#allocation5 + $0x318] sm:$0xff]  ;;  %v280_v17 = vld [vmem:[#allocation5 + $0x308] sm:$0xff]  ;;  %v611_v41 = vmov 0  }
  0x46   :  { %443 = vmatpush.msra.mxu2 %v266_v50  ;;  %463 = vmatpush.msra.mxu3 %v298_v51  ;;  %v77_v18 = vld [vmem:[%s681_s2] sm:$0xf] }
  0x47   :  { %404 = vmatpush.msra.mxu0 %v200_v44  ;;  %424 = vmatpush.msra.mxu1 %v232_v45  ;;  %v79_v19 = vperm.slane %v77_v18, 0  ;;  %v80_v20 = vperm.slane %v77_v18, 1  ;;  %v81_v27 = vperm.slane %v77_v18, 2  ;;  %v82_v28 = vperm.slane %v77_v18, 3  ;;  %v552_v39 = vld [vmem:[#allocation2] ss:$0 sm:$0xff] }
  0x48   :  { %444 = vmatpush.msra.mxu2 %v264_v54  ;;  %464 = vmatpush.msra.mxu3 %v296_v55  ;;  %v311_v40 = vld [vmem:[%s683_s4] sm:$0x3] }
  0x49   :  { %405 = vmatpush.msra.mxu0 %v198_v46  ;;  %425 = vmatpush.msra.mxu1 %v230_v47  ;;  %v313_v43 = vperm.slane %v311_v40, 0  ;;  %v314_v47 = vperm.slane %v311_v40, 1 }
  0x4a   :  { %445 = vmatpush.msra.mxu2 %v262_v58  ;;  %465 = vmatpush.msra.mxu3 %v294_v59  ;;  %v483_v59 = vld [vmem:[%s684_s5] sm:$0xff] }
  0x4b   :  { %406 = vmatpush.msra.mxu0 %v196_v48  ;;  %426 = vmatpush.msra.mxu1 %v228_v49 }
  0x4c   :  { %446 = vmatpush.msra.mxu2 %v260_v62  ;;  %466 = vmatpush.msra.mxu3 %v292_v63 }
  0x4d   :  { %407 = vmatpush.msra.mxu0 %v194_v52  ;;  %427 = vmatpush.msra.mxu1 %v226_v53 }
  0x4e   :  { %447 = vmatpush.msra.mxu2 %v258_v2  ;;  %467 = vmatpush.msra.mxu3 %v290_v3 }
  0x4f   :  { %408 = vmatpush.msra.mxu0 %v192_v56  ;;  %428 = vmatpush.msra.mxu1 %v224_v57 }
  0x50   :  { %448 = vmatpush.msra.mxu2 %v256_v6  ;;  %468 = vmatpush.msra.mxu3 %v288_v7 }
  0x51   :  { %409 = vmatpush.msra.mxu0 %v190_v60  ;;  %429 = vmatpush.msra.mxu1 %v222_v61 }
  0x52   :  { %449 = vmatpush.msra.mxu2 %v254_v10  ;;  %469 = vmatpush.msra.mxu3 %v286_v11 }
  0x53   :  { %410 = vmatpush.msra.mxu0 %v188_v0  ;;  %430 = vmatpush.msra.mxu1 %v220_v1  ;;  %v484_v1 = vld [vmem:[%s684_s5 + $0x8] sm:$0xff] }
  0x54   :  { %450 = vmatpush.msra.mxu2 %v252_v12  ;;  %470 = vmatpush.msra.mxu3 %v284_v13 }
  0x55   :  { %411 = vmatpush.msra.mxu0 %v186_v4  ;;  %431 = vmatpush.msra.mxu1 %v218_v5 }
  0x56   :  { %451 = vmatpush.msra.mxu2 %v250_v14  ;;  %471 = vmatpush.msra.mxu3 %v282_v15 }
  0x57   :  { %412 = vmatpush.msra.mxu0 %v184_v8  ;;  %432 = vmatpush.msra.mxu1 %v216_v9 }
  0x58   :  { %452 = vmatpush.msra.mxu2 %v248_v16  ;;  %472 = vmatpush.msra.mxu3 %v280_v17 }
  0x59   :  { %551 = vset.pattern.permute.xlu0 %v611_v41 }
  0x5a   :  { %489 = vperm.xlu0 %551, %v552_v39  }
  0x94   :  { %v108_v21 = vpop.f32.mrf.mxu0  ;;  %v128_v22 = vpop.f32.mrf.mxu1 }
  0x95   :  { %v109_v23 = vadd.f32 %v108_v21, %v79_v19  ;;  %v129_v24 = vadd.f32 %v128_v22, %v80_v20 }
  0x97   :  { %v175_v25 = vmul.f32 0.2, %v109_v23  ;;  %v176_v26 = vmul.f32 0.2, %v129_v24  ;;  %vm171_vm1 = vcmp.gt.f32.partialorder %v109_v23, 0.0  ;;  %vm172_vm2 = vcmp.gt.f32.partialorder %v129_v24, 0.0 }
  0x99   :  { %v179_v29 = vsel %vm171_vm1, %v109_v23, %v175_v25  ;;  %v180_v30 = vsel %vm172_vm2, %v129_v24, %v176_v26 }
  0x9a   :  { %333 = vmatmul.f32.vlgmr.msrb.gmra.mxu0 %v179_v29  ;;  %353 = vmatmul.f32.vlgmr.msrb.gmra.mxu1 %v180_v30 }
  0x9b   :  { %v148_v31 = vpop.f32.mrf.mxu2  ;;  %v168_v32 = vpop.f32.mrf.mxu3 }
  0x9c   :  { %v149_v33 = vadd.f32 %v148_v31, %v81_v27  ;;  %v169_v34 = vadd.f32 %v168_v32, %v82_v28 }
  0x9e   :  { %v177_v35 = vmul.f32 0.2, %v149_v33  ;;  %v178_v36 = vmul.f32 0.2, %v169_v34  ;;  %vm173_vm3 = vcmp.gt.f32.partialorder %v149_v33, 0.0  ;;  %vm174_vm4 = vcmp.gt.f32.partialorder %v169_v34, 0.0 }
  0xa0   :  { %v181_v37 = vsel %vm173_vm3, %v149_v33, %v177_v35  ;;  %v182_v38 = vsel %vm174_vm4, %v169_v34, %v178_v36 }
  0xa1   :  { %373 = vmatmul.f32.vlgmr.msrb.gmra.mxu2 %v181_v37  ;;  %393 = vmatmul.f32.vlgmr.msrb.gmra.mxu3 %v182_v38 }
  0xa2   :  { %413 = vmatmul.f32.vlgmr.msra.gmra.mxu0 %v179_v29  ;;  %433 = vmatmul.f32.vlgmr.msra.gmra.mxu1 %v180_v30 }
  0xa9   :  { %453 = vmatmul.f32.vlgmr.msra.gmra.mxu2 %v181_v37  ;;  %473 = vmatmul.f32.vlgmr.msra.gmra.mxu3 %v182_v38 }
  0xcc   :  { %v490_v2 = vpop.permute.xlu0 %489 }
 0x117   :  { %v334_v42 = vpop.f32.mrf.mxu0  ;;  %v354_v45 = vpop.f32.mrf.mxu1 }
 0x118   :  { %v335_v44 = vadd.f32 %v334_v42, %v313_v43 }
 0x11a   :  { %v355_v46 = vadd.f32 %v354_v45, %v335_v44 }
 0x11f   :  { %v414_v48 = vpop.f32.mrf.mxu0  ;;  %v434_v55 = vpop.f32.mrf.mxu1 }
 0x120   :  { %v415_v52 = vadd.f32 %v414_v48, %v314_v47 }
 0x122   :  { %v435_v56 = vadd.f32 %v434_v55, %v415_v52 }
 0x124   :  { %v374_v49 = vpop.f32.mrf.mxu2  ;;  %v394_v50 = vpop.f32.mrf.mxu3 }
 0x125   :  { %v375_v51 = vadd.f32 %v374_v49, %v355_v46 }
 0x127   :  { %v395_v53 = vadd.f32 %v394_v50, %v375_v51 }
 0x129   :  { %vm477_vm5 = vcmp.gt.f32.partialorder %v395_v53, 0.0  ;;  %v479_v54 = vmul.f32 0.2, %v395_v53 }
 0x12b   :  { %v481_v57 = vsel %vm477_vm5, %v395_v53, %v479_v54 }
 0x12c   :  { %v454_v58 = vpop.f32.mrf.mxu2  ;;  %507 = vmatpush.xpose.msrb.mxu0 %v481_v57  ;;  %v474_v61 = vpop.f32.mrf.mxu3 }
 0x12d   :  { %v455_v60 = vadd.f32 %v454_v58, %v435_v56 }
 0x12f   :  { %v475_v62 = vadd.f32 %v474_v61, %v455_v60  ;;  %508 = vmatmul.f32.vlgmr.msrb.gmra.mxu0 %v483_v59 }
 0x131   :  { %vm478_vm6 = vcmp.gt.f32.partialorder %v475_v62, 0.0  ;;  %v480_v63 = vmul.f32 0.2, %v475_v62 }
 0x133   :  { %v482_v0 = vsel %vm478_vm6, %v475_v62, %v480_v63 }
 0x134   :  { %527 = vmatpush.xpose.msrb.mxu1 %v482_v0 }
 0x137   :  { %528 = vmatmul.f32.vlgmr.msrb.gmra.mxu1 %v484_v1 }
 0x1ac   :  { %v509_v3 = vpop.f32.mrf.mxu0 }
 0x1ad   :  { %v510_v4 = vadd.f32 %v509_v3, %v490_v2 }
 0x1b4   :  { %v529_v5 = vpop.f32.mrf.mxu1 }
 0x1b5   :  { %v530_v6 = vadd.f32 %v529_v5, %v510_v4 }
 0x1b7   :  { %533 = vst.msk [vmem:[%s686_s7] sm:$0xff] %vm532_vm7, %v530_v6 }
 0x1b8   :  { %538 = vsyncpa [#allocation4], 1 }
 0x1b9   :  { %539 = vsyncpa [#allocation6], 1 }

</bundles_post_ra>
